<compile_context>
chip_gen: v6e
topology: v6e:2x2x1
jax: 0.10.0
libtpu: 0.0.40
codegen_flags: <defaults>
</compile_context>

<pallas_src>
import jax
import jax.numpy as jnp
import numpy as np
from jax.experimental import pallas as pl
from jax.experimental.pallas import tpu as pltpu


def _round_up(x, m):
    return ((x + m - 1) // m) * m


# ---------------------------------------------------------------------------
# Pallas kernel: fused  y = PReLU(ub @ W1_h + q_proj) @ W2 + b2
#   q_proj = query @ W1_q + b1  (precomputed per batch row, includes b1)
# ---------------------------------------------------------------------------
def _lau_kernel(qproj_ref, ub_ref, w1h_ref, w2_ref, b2_ref, alpha_ref, o_ref):
    ub = ub_ref[...]                                           # (tt, Dh)

    # fc1 (history part), f32 accumulation on the MXU
    h = jnp.dot(ub, w1h_ref[...], preferred_element_type=jnp.float32)  # (tt, H1)
    # add per-batch query projection (already contains b1)
    h = h + qproj_ref[...]                                     # (1, H1) f32

    # PReLU with a single shared parameter (PyTorch nn.PReLU default), f32
    alpha = alpha_ref[0]                                       # SMEM scalar
    h = jnp.where(h > 0.0, h, alpha * h)

    # fc2 + bias, f32 accumulation
    y = jnp.dot(h.astype(w2_ref.dtype), w2_ref[...],
                preferred_element_type=jnp.float32) + b2_ref[...]
    o_ref[...] = y.astype(o_ref.dtype)


def local_activation_unit(query, user_behavior, params, *, tt=1024,
                          matmul_dtype=jnp.float32):
    """query: (B, Dq) f32, user_behavior: (B, T, Dh) f32 -> (B, T, H2) f32."""
    w1, b1, alpha, w2, b2 = (params["w1"], params["b1"], params["alpha"],
                             params["w2"], params["b2"])
    B, Dq = query.shape
    _, T, Dh = user_behavior.shape
    H1 = w1.shape[1]
    H2 = w2.shape[1]

    # --- split W1 into query / history halves; do the query half once per b ---
    w1_q = w1[:Dq, :]                                          # (Dq, H1)
    w1_h = w1[Dq:, :]                                          # (Dh, H1)
    q_proj = (jnp.dot(query, w1_q, precision=jax.lax.Precision.HIGHEST)
              + b1).reshape(B, 1, H1).astype(jnp.float32)      # (B, 1, H1)

    # --- time tiling: sublane-aligned tile, pad T, slice the output back ---
    tt = max(8, min(int(tt), _round_up(T, 8)))                 # multiple of 8
    Tp = _round_up(T, tt)
    ub = user_behavior
    if Tp != T:
        ub = jnp.pad(ub, ((0, 0), (0, Tp - T), (0, 0)))
    ub = ub.astype(matmul_dtype)
    w1_h = w1_h.astype(matmul_dtype)
    w2_c = w2.astype(matmul_dtype)
    b2_2d = b2.reshape(1, H2).astype(jnp.float32)
    alpha_1d = jnp.asarray(alpha, jnp.float32).reshape(1)

    grid = (B, Tp // tt)

    out = pl.pallas_call(
        _lau_kernel,
        out_shape=jax.ShapeDtypeStruct((B, Tp, H2), jnp.float32),
        grid=grid,
        in_specs=[
            pl.BlockSpec((None, 1, H1), lambda b, t: (b, 0, 0)),   # q_proj row
            pl.BlockSpec((None, tt, Dh), lambda b, t: (b, t, 0)),  # ub tile
            pl.BlockSpec((Dh, H1), lambda b, t: (0, 0)),           # W1_h (resident)
            pl.BlockSpec((H1, H2), lambda b, t: (0, 0)),           # W2   (resident)
            pl.BlockSpec((1, H2), lambda b, t: (0, 0)),            # b2
            pl.BlockSpec(memory_space=pltpu.MemorySpace.SMEM),     # PReLU alpha
        ],
        out_specs=pl.BlockSpec((None, tt, H2), lambda b, t: (b, t, 0)),
        compiler_params=pltpu.CompilerParams(
            dimension_semantics=("parallel", "parallel")),
    )(q_proj, ub, w1_h, w2_c, b2_2d, alpha_1d)

    return out[:, :T, :]


# ---------------------------------------------------------------------------
# Pure-JAX reference (mirrors the PyTorch module)
# ---------------------------------------------------------------------------
def local_activation_unit_ref(query, user_behavior, params):
    w1, b1, alpha, w2, b2 = (params["w1"], params["b1"], params["alpha"],
                             params["w2"], params["b2"])
    B, Dq = query.shape
    T = user_behavior.shape[1]
    queries = jnp.broadcast_to(query[:, None, :], (B, T, Dq))
    x = jnp.concatenate([queries, user_behavior], axis=-1)
    h = x @ w1 + b1
    h = jnp.where(h > 0.0, h, alpha * h)
    return h @ w2 + b2


if __name__ == "__main__":
    # Small deterministic shapes consistent with the module.
    B, T = 2, 8
    query_dim, hist_dim = 32, 32
    hidden = [80, 40]
    D = query_dim + hist_dim

    key = jax.random.PRNGKey(0)
    k_q, k_u, k_w1, k_b1, k_w2, k_b2 = jax.random.split(key, 6)

    query = jax.random.normal(k_q, (B, query_dim), dtype=jnp.float32)
    user_behavior = jax.random.normal(k_u, (B, T, hist_dim), dtype=jnp.float32)

    # Deterministic parameter init (weights stored transposed: x @ W).
    params = {
        "w1": jax.random.normal(k_w1, (D, hidden[0]), dtype=jnp.float32) * 0.1,
        "b1": jax.random.normal(k_b1, (hidden[0],), dtype=jnp.float32) * 0.1,
        "alpha": jnp.array(0.25, dtype=jnp.float32),   # nn.PReLU default init
        "w2": jax.random.normal(k_w2, (hidden[0], hidden[1]), dtype=jnp.float32) * 0.1,
        "b2": jax.random.normal(k_b2, (hidden[1],), dtype=jnp.float32) * 0.1,
    }

    out = local_activation_unit(query, user_behavior, params)
    out = jax.block_until_ready(out)

    ref = local_activation_unit_ref(query, user_behavior, params)
    np.testing.assert_allclose(np.asarray(out), np.asarray(ref),
                               rtol=1e-5, atol=1e-5)
    assert out.shape == (B, T, hidden[1])

    # Second case: T not a multiple of the sublane tile (exercises pad + slice).
    B2, T2 = 3, 13
    k_q2, k_u2 = jax.random.split(jax.random.PRNGKey(1), 2)
    query2 = jax.random.normal(k_q2, (B2, query_dim), dtype=jnp.float32)
    ub2 = jax.random.normal(k_u2, (B2, T2, hist_dim), dtype=jnp.float32)
    out2 = jax.block_until_ready(local_activation_unit(query2, ub2, params))
    ref2 = local_activation_unit_ref(query2, ub2, params)
    np.testing.assert_allclose(np.asarray(out2), np.asarray(ref2),
                               rtol=1e-5, atol=1e-5)
    assert out2.shape == (B2, T2, hidden[1])

    print("KERNEL_OK")
</pallas_src>

<mosaic_0001>
module attributes {stable_mosaic.version = 11 : i64} {
  func.func @_lau_kernel(%arg0: i32, %arg1: i32, %arg2: memref<1x1x80xf32, #tpu.memory_space<vmem>>, %arg3: memref<1x8x32xf32, #tpu.memory_space<vmem>>, %arg4: memref<32x80xf32, #tpu.memory_space<vmem>>, %arg5: memref<80x40xf32, #tpu.memory_space<vmem>>, %arg6: memref<1x40xf32, #tpu.memory_space<vmem>>, %arg7: memref<1xf32, #tpu.memory_space<smem>>, %arg8: memref<1x8x40xf32, #tpu.memory_space<vmem>>) attributes {dimension_semantics = [#tpu.dimension_semantics<parallel>, #tpu.dimension_semantics<parallel>], iteration_bounds = array<i64: 2, 1>, scalar_prefetch = 0 : i64, scratch_operands = 0 : i64, tpu.core_type = #tpu.core_type<tc>, window_params = [{transform_indices = @transform_0, window_bounds = array<i64: 1, 1, 80>}, {transform_indices = @transform_1, window_bounds = array<i64: 1, 8, 32>}, {pipeline_mode = #tpu.pipeline_mode<synchronous>, transform_indices = @transform_2, window_bounds = array<i64: 32, 80>}, {pipeline_mode = #tpu.pipeline_mode<synchronous>, transform_indices = @transform_3, window_bounds = array<i64: 80, 40>}, {pipeline_mode = #tpu.pipeline_mode<synchronous>, transform_indices = @transform_4, window_bounds = array<i64: 1, 40>}, {transform_indices = @transform_5, window_bounds = array<i64: 1>}, {transform_indices = @transform_6, window_bounds = array<i64: 1, 8, 40>}]} {
    %c0 = arith.constant 0 : index
    %c0_0 = arith.constant 0 : index
    %c0_1 = arith.constant 0 : index
    %0 = vector.load %arg3[%c0, %c0_0, %c0_1] : memref<1x8x32xf32, #tpu.memory_space<vmem>>, vector<1x8x32xf32>
    %1 = vector.shape_cast %0 : vector<1x8x32xf32> to vector<8x32xf32>
    %c0_2 = arith.constant 0 : index
    %c0_3 = arith.constant 0 : index
    %2 = vector.load %arg4[%c0_2, %c0_3] : memref<32x80xf32, #tpu.memory_space<vmem>>, vector<32x80xf32>
    %cst = arith.constant dense<0.000000e+00> : vector<8x80xf32>
    %3 = tpu.matmul %1, %2, %cst {dimension_numbers = #tpu.dot_dimension_numbers<[1], [0], [0], [1], [0, 0, 1, 1], [], []>} : vector<8x32xf32>, vector<32x80xf32>, vector<8x80xf32> -> vector<8x80xf32>
    %c0_4 = arith.constant 0 : index
    %c0_5 = arith.constant 0 : index
    %c0_6 = arith.constant 0 : index
    %4 = vector.load %arg2[%c0_4, %c0_5, %c0_6] : memref<1x1x80xf32, #tpu.memory_space<vmem>>, vector<1x1x80xf32>
    %5 = vector.shape_cast %4 : vector<1x1x80xf32> to vector<1x80xf32>
    %6 = vector.broadcast %5 : vector<1x80xf32> to vector<8x80xf32>
    %7 = arith.addf %3, %6 : vector<8x80xf32>
    %c0_7 = arith.constant 0 : index
    %8 = memref.load %arg7[%c0_7] : memref<1xf32, #tpu.memory_space<smem>>
    %cst_8 = arith.constant 0.000000e+00 : f32
    %9 = vector.broadcast %cst_8 : f32 to vector<8x80xf32>
    %10 = arith.cmpf ogt, %7, %9 : vector<8x80xf32>
    %11 = vector.broadcast %8 : f32 to vector<8x80xf32>
    %12 = arith.mulf %11, %7 : vector<8x80xf32>
    %13 = arith.select %10, %7, %12 : vector<8x80xi1>, vector<8x80xf32>
    %c0_9 = arith.constant 0 : index
    %c0_10 = arith.constant 0 : index
    %14 = vector.load %arg5[%c0_9, %c0_10] : memref<80x40xf32, #tpu.memory_space<vmem>>, vector<80x40xf32>
    %cst_11 = arith.constant dense<0.000000e+00> : vector<8x40xf32>
    %15 = tpu.matmul %13, %14, %cst_11 {dimension_numbers = #tpu.dot_dimension_numbers<[1], [0], [0], [1], [0, 0, 1, 1], [], []>} : vector<8x80xf32>, vector<80x40xf32>, vector<8x40xf32> -> vector<8x40xf32>
    %c0_12 = arith.constant 0 : index
    %c0_13 = arith.constant 0 : index
    %16 = vector.load %arg6[%c0_12, %c0_13] : memref<1x40xf32, #tpu.memory_space<vmem>>, vector<1x40xf32>
    %17 = vector.broadcast %16 : vector<1x40xf32> to vector<8x40xf32>
    %18 = arith.addf %15, %17 : vector<8x40xf32>
    %c0_14 = arith.constant 0 : index
    %c0_15 = arith.constant 0 : index
    %c0_16 = arith.constant 0 : index
    %19 = vector.load %arg8[%c0_14, %c0_15, %c0_16] : memref<1x8x40xf32, #tpu.memory_space<vmem>>, vector<1x8x40xf32>
    %20 = vector.shape_cast %19 : vector<1x8x40xf32> to vector<8x40xf32>
    %21 = vector.shape_cast %18 : vector<8x40xf32> to vector<1x8x40xf32>
    tpu.vector_store %arg8[%c0_14, %c0_15, %c0_16], %21 {strides = array<i32>} : memref<1x8x40xf32, #tpu.memory_space<vmem>>, vector<1x8x40xf32>,
    return
  }
  func.func @transform_0(%arg0: i32, %arg1: i32) -> (i32, i32, i32) {
    %c0_i32 = arith.constant 0 : i32
    %c0_i32_0 = arith.constant 0 : i32
    %c0_i32_1 = arith.constant 0 : i32
    return %arg0, %c0_i32, %c0_i32_0 : i32, i32, i32
  }
  func.func @transform_1(%arg0: i32, %arg1: i32) -> (i32, i32, i32) {
    %c0_i32 = arith.constant 0 : i32
    %c0_i32_0 = arith.constant 0 : i32
    return %arg0, %arg1, %c0_i32 : i32, i32, i32
  }
  func.func @transform_2(%arg0: i32, %arg1: i32) -> (i32, i32) {
    %c0_i32 = arith.constant 0 : i32
    %c0_i32_0 = arith.constant 0 : i32
    %c0_i32_1 = arith.constant 0 : i32
    return %c0_i32, %c0_i32_0 : i32, i32
  }
  func.func @transform_3(%arg0: i32, %arg1: i32) -> (i32, i32) {
    %c0_i32 = arith.constant 0 : i32
    %c0_i32_0 = arith.constant 0 : i32
    %c0_i32_1 = arith.constant 0 : i32
    return %c0_i32, %c0_i32_0 : i32, i32
  }
  func.func @transform_4(%arg0: i32, %arg1: i32) -> (i32, i32) {
    %c0_i32 = arith.constant 0 : i32
    %c0_i32_0 = arith.constant 0 : i32
    %c0_i32_1 = arith.constant 0 : i32
    return %c0_i32, %c0_i32_0 : i32, i32
  }
  func.func @transform_5(%arg0: i32, %arg1: i32) -> i32 {
    %c0_i32 = arith.constant 0 : i32
    %c0_i32_0 = arith.constant 0 : i32
    return %c0_i32 : i32
  }
  func.func @transform_6(%arg0: i32, %arg1: i32) -> (i32, i32, i32) {
    %c0_i32 = arith.constant 0 : i32
    %c0_i32_0 = arith.constant 0 : i32
    return %arg0, %arg1, %c0_i32 : i32, i32, i32
  }
}

</mosaic_0001>

<bundles_post_ra>
// kernel: tpu_custom_call.1
= control target key start
LH: loop header
LB: loop body
LE: loop exit
PB: predicated region body
PF: predicated region fallthrough
CT: control target
= control target key end

     0   :  { %s966_s0 = inlined_call_operand.vmem [shape: f32[2,1,80], index: 0, kind: input, shape index: {}]   ;;  %s967_s1 = inlined_call_operand.vmem [shape: f32[2,8,32], index: 1, kind: input, shape index: {}]   ;;  %s968_s2 = inlined_call_operand.vmem [shape: f32[32,80], index: 2, kind: input, shape index: {}]   ;;  %s969_s3 = inlined_call_operand.vmem [shape: f32[80,40], index: 3, kind: input, shape index: {}]   ;;  %s970_s4 = inlined_call_operand.vmem [shape: f32[1,40], index: 4, kind: input, shape index: {}]   ;;  %s971_s5 = inlined_call_operand.<no memory space> [shape: f32[1], index: 5, kind: input, shape index: {}]   ;;  %s972_s6 = inlined_call_operand.hbm [shape: f32[2,8,40], index: 6, kind: output, shape index: {}]  }
   0x1   :  { %11 = sst [smem:[#allocation2]] %s971_s5 }
   0x2   :  { %12 = vsyncpa [#allocation4], 0 }
   0x3   :  { %14 = vsyncpa [#allocation4 + $0x1], 0  ;;  %s807_s23 = smov 0   ;;  %s809_s24 = smov 0  }
   0x4   :  { %s811_s25 = smov 0   ;;  %s813_s26 = smov 0  }
   0x5   :  { %s815_s27 = smov 0   ;;  %s817_s28 = smov 0  }
   0x6 LB: > { %s566_s5 = sadd.s32 4294967295, %s764_s28   ;;  %s567_s29 = sadd.s32 4294967294, %s764_s28   ;;  %s764_s28 = sphi %s817_s28, %s20_s28   ;;  %s760_s27 = sphi %s815_s27, %s979_s27   ;;  %s756_s26 = sphi %s813_s26, %s978_s26   ;;  %s752_s25 = sphi %s811_s25, %s977_s25   ;;  %s748_s24 = sphi %s809_s24, %s976_s24   ;;  %s744_s23 = sphi %s807_s23, %s975_s23  }
   0x7   : > { %s32_s30 = sadd.s32 1, %s760_s27  ;;  %s179_s7 = sadd.s32 1, %s752_s25 }
   0x8   : > { %p34_p0 = scmp.ge.s32.totalorder %s32_s30, 2  ;;  %p189_p1 = scmp.ne.s32.totalorder %s752_s25, %s748_s24 }
   0x9   : > { %p190_p2 = scmp.eq.s32.totalorder %s566_s5, 1  ;;  %p195_p3 = scmp.ne.s32.totalorder %s748_s24, %s744_s23 }
   0xa   : > { %s981_s30 = smov (%p34_p0, %s32_s30), 0  ;;  %p196_p5 = scmp.eq.s32.totalorder %s567_s29, 1 }
   0xb   : > { %p847_p4 = por %p190_p2, %p189_p1  ;;  %s174_s9 = ssub.s32 %s760_s27, %s981_s30 }
   0xc   : > { %p570_p6 = scmp.ge.s32.totalorder %s764_s28, 1  ;;  %p177_p7 = scmp.eq.s32.totalorder %s174_s9, 0 }
   0xd   : > { %p854_p8 = por %p196_p5, %p195_p3  ;;  %p242_p9 = scmp.lt.s32.totalorder %s764_s28, 3 }
   0xe   : > { %s860_s11 = scalar_select %p177_p7, %s752_s25, %s179_s7  }
   0xf   : > { %p243_p10 = pnand %p570_p6, %p242_p9 }
  0x10   : > { %p277_p11 = scmp.lt.s32.totalorder (!%p243_p10), %s756_s26, 1  ;;  %s373_s16 = sld [smem:[#allocation2]] (!%p243_p10) }
  0x11   : > { %246 = sbr.rel (%p243_p10) target bundleno = 437 (0x1b5), region = 44  ;;  %s274_s21 = sand.u32 (!%p243_p10), 1, %s748_s24  }
  0x12   : > { %s571_s22 = sshll.u32 (!%p243_p10), %s274_s21, 3  ;;  %s578_s7 = sshll.u32 (!%p243_p10), %s756_s26, 7 }
  0x13   : > { %s276_s9 = scalar_lea.vmem (!%p243_p10), [#allocation3], %s571_s22  ;;  %s926_s14 = scalar_lea.hbm (!%p243_p10), %s972_s6, %s578_s7 }
  0x16   : > { %v291_v0 = vld [vmem:[%s968_s2 + $0x18] sm:$0xff]  ;;  %v766_v1 = vmov 0.0   ;;  %v290_v2 = vld [vmem:[%s968_s2 + $0x10] sm:$0xff]  ;;  %vm767_vm0 = vmmov 0   ;;  %v387_v3 = vld [vmem:[%s969_s3 + $0x48] sm:$0xff]  ;;  %s874_s18 = scalar_select %p277_p11, %s756_s26, 1  ;;  %v375_v18 = vstv %s373_s16 }
  0x17   : > { %597 = vmatprep.subr.mxu0 %v766_v1  ;;  %605 = vmatprep.mubr.msk.f32.mxu0 %vm767_vm0, %v766_v1  ;;  %v386_v4 = vld [vmem:[%s969_s3 + $0x40] sm:$0xff]  ;;  %v289_v5 = vld [vmem:[%s968_s2 + $0x8] sm:$0xff]  ;;  %v385_v6 = vld [vmem:[%s969_s3 + $0x38] sm:$0xff]  ;;  %vm299_vm1 = vcmask 261120   ;;  %vm395_vm3 = vcmask 654336   ;;  %vm469_vm4 = vcmask 326656  }
  0x18   : > { %598 = vmatpush3.msra.mxu0 %v291_v0  ;;  %608 = vmatprep.subr.mxu1 %v766_v1  ;;  %s572_s5 = sshll.u32 %s874_s18, 3  ;;  %v288_v7 = vld [vmem:[%s968_s2] sm:$0xff]  ;;  %v384_v9 = vld [vmem:[%s969_s3 + $0x30] sm:$0xff]  ;;  %v383_v10 = vld [vmem:[%s969_s3 + $0x28] sm:$0xff]  ;;  %s279_s20 = scalar_lea.vmem %s966_s0, %s874_s18 }
  0x19   : > { %599 = vmatprep.subr.mxu0 %v766_v1  ;;  %609 = vmatpush3.msra.mxu1 %v387_v3  ;;  %s286_s15 = scalar_lea.vmem %s967_s1, %s572_s5  ;;  %v382_v11 = vld [vmem:[%s969_s3 + $0x20] sm:$0xff]  ;;  %v381_v12 = vld [vmem:[%s969_s3 + $0x18] sm:$0xff]  ;;  %v380_v13 = vld [vmem:[%s969_s3 + $0x10] sm:$0xff]  ;;  %s486_s18 = sshll.u32 %s276_s9, 4  ;;  %s487_s18 = int_to_ptr.vmem [resolvable:$true] %s486_s18 }
  0x1a   : > { %600 = vmatpush3.msra.mxu0 %v290_v2  ;;  %610 = vmatprep.subr.mxu1 %v766_v1  ;;  %v287_v8 = vld [vmem:[%s286_s15] sm:$0xff]  ;;  %v379_v14 = vld [vmem:[%s969_s3 + $0x8] sm:$0xff]  ;;  %s472_s15 = scalar_lea.sflag [#allocation4], %s274_s21  ;;  %s688_s16 = scalar_lea.vmem %s487_s18, 128 }
  0x1b   : > { %601 = vmatprep.subr.mxu0 %v766_v1  ;;  %611 = vmatpush3.msra.mxu1 %v386_v4  ;;  %v378_v15 = vld [vmem:[%s969_s3] sm:$0xff]  ;;  %p689_p12 = scmp.ne.s32.totalorder %s487_s18, %s688_s16  ;;  %s768_s26 = smov [#allocation3]  }
  0x1c   : > { %602 = vmatpush3.msra.mxu0 %v289_v5  ;;  %612 = vmatprep.subr.mxu1 %v766_v1  ;;  %v573_v16 = vld [vmem:[%s279_s20] ss:$0 sm:$0xff]  ;;  %s692_s17 = sshll.u32 %s768_s26, 4  ;;  %s693_s17 = int_to_ptr.vmem [resolvable:$false] %s692_s17 }
  0x1d   : > { %603 = vmatprep.subr.mxu0 %v766_v1  ;;  %613 = vmatpush3.msra.mxu1 %v385_v6  ;;  %v575_v23 = vld [vmem:[%s970_s4] ss:$0 sm:$0xff]  ;;  %p690_p13 = pnand %p689_p12, %p847_p4  ;;  %s694_s19 = scalar_lea.vmem %s693_s17, 256 }
  0x1e   : > { %604 = vmatpush3.msra.mxu0 %v288_v7  ;;  %614 = vmatprep.subr.mxu1 %v766_v1  ;;  %p695_p1 = scmp.lt.s32.totalorder %s487_s18, %s693_s17  ;;  %p696_p2 = scmp.lt.s32.totalorder %s694_s19, %s688_s16 }
  0x1f   : > { %606 = vmatmul.mubr.msk.f32.vlgmr.msra.gmra.mxu0 %vm299_vm1, %v287_v8  ;;  %615 = vmatpush3.msra.mxu1 %v384_v9  ;;  %p691_p0 = pneg %p690_p13 }
  0x20   : > { %616 = vmatprep.subr.mxu1 %v766_v1  ;;  %628 = vmatprep.mubr.msk.f32.mxu1 %vm767_vm0, %v766_v1  ;;  %p697_p3 = por %p696_p2, %p695_p1 }
  0x21   : > { %617 = vmatpush3.msra.mxu1 %v383_v10 }
  0x22   : > { %618 = vmatprep.subr.mxu1 %v766_v1  ;;  %p698_p5 = pnand %p697_p3, %p691_p0 }
  0x23   : > { %619 = vmatpush3.msra.mxu1 %v382_v11 }
  0x24   : > { %620 = vmatprep.subr.mxu1 %v766_v1 }
  0x25   : > { %621 = vmatpush3.msra.mxu1 %v381_v12 }
  0x26   : > { %622 = vmatprep.subr.mxu1 %v766_v1 }
  0x27   : > { %623 = vmatpush3.msra.mxu1 %v380_v13 }
  0x28   : > { %624 = vmatprep.subr.mxu1 %v766_v1 }
  0x29   : > { %625 = vmatpush3.msra.mxu1 %v379_v14 }
  0x2a   : > { %626 = vmatprep.subr.mxu1 %v766_v1 }
  0x2b   : > { %627 = vmatpush3.msra.mxu1 %v378_v15 }
  0xdf   : > { %v369_v17 = vpop.f32.mrf.mxu0 }
  0xe0   : > { %v370_v19 = vadd.f32 %v573_v16, %v369_v17 }
  0xe1   : > { %v607_v20 = vpop.f32.mrf.mxu0 }
  0xe2   : > { %vm374_vm2 = vcmp.gt.f32.partialorder %v370_v19, 0.0  ;;  %v376_v21 = vmul.f32 %v375_v18, %v370_v19 }
  0xe4   : > { %v377_v22 = vsel %vm374_vm2, %v370_v19, %v376_v21 }
  0xe5   : > { %629 = vmatmul.mubr.msk.f32.vlgmr.msra.gmra.mxu1 %vm395_vm3, %v377_v22 }
 0x1a5   : > { %v465_v24 = vpop.f32.mrf.mxu1 }
 0x1a6   : > { %v466_v25 = vadd.f32 %v575_v23, %v465_v24 }
 0x1a7   : > { %v630_v26 = vpop.f32.mrf.mxu1 }
 0x1a8   : > { %470 = vst.msk [vmem:[%s276_s9] sm:$0xff] %vm469_vm4, %v466_v25 }
 0x1a9   : > { %701 = shalt.err (!%p698_p5)
}
 0x1aa   : > { %s702_s20 = scalar_lea.hbm %s926_s14, 128  ;;  %s706_s5 = scalar_lea.hbm %s972_s6, 256 }
 0x1ab   : > { %p703_p6 = scmp.ne.s32.totalorder %s926_s14, %s702_s20  ;;  %p707_p10 = scmp.lt.s32.totalorder %s926_s14, %s972_s6 }
 0x1ac   : > { %p708_p11 = scmp.lt.s32.totalorder %s706_s5, %s702_s20 }
 0x1ad   : > { %p704_p7 = pnand %p703_p6, %p847_p4 }
 0x1ae   : > { %p709_p12 = por %p708_p11, %p707_p10 }
 0x1af   : > { %p705_p9 = pneg %p704_p7 }
 0x1b1   : > { %p710_p13 = pnand %p709_p12, %p705_p9 }
 0x1b3   : > { %713 = shalt.err (!%p710_p13)
}
 0x1b4   : > { %631 = dma.vmem_to_hbm [thread:$0]  (%p847_p4), %s487_s18, 128, %s926_s14, %s472_s15  }
 0x1b5 PF: > { %p637_p0 = scmp.ge.s32.totalorder %s764_s28, 2  ;;  %s498_s9 = sand.u32 1, %s744_s23  }
 0x1b6   : > { %s499_s12 = scalar_lea.sflag [#allocation4], %s498_s9 }
 0x1b7   : > { %p634_p1 = pnand %p637_p0, %p854_p8 }
 0x1b9   : > { %p635_p2 = pneg %p634_p1 }
 0x1bb   : > { %739 = dma.done.wait (%p635_p2), %s499_s12, 128  }
 0x1bc   : > { %741 = vsyncadd (%p635_p2), %s499_s12, 4294967168  ;;  %s20_s28 = sadd.s32 1, %s764_s28   ;;  %s975_s23 = smov %s748_s24 }
 0x1bd   : > { %p17_p3 = scmp.ge.s32.totalorder %s20_s28, 4   ;;  %s976_s24 = smov %s752_s25 }
 0x1be   : > { %s977_s25 = smov %s860_s11  ;;  %s978_s26 = smov %s760_s27 }
 0x1bf   : > { %s979_s27 = smov %s981_s30  ;;  %19 = sbr.rel (!%p17_p3) target bundleno = 6 (0x6), region = 82 }
 0x1c4   :  { %504 = vsyncpa [#allocation4], 1 }
 0x1c5   :  { %506 = vsyncpa [#allocation4 + $0x1], 1 }

</bundles_post_ra>
